<compile_context>
chip_gen: v7x
topology: tpu7x:2x2x1
jax: 0.10.0
libtpu: 0.0.40
codegen_flags: <defaults>
</compile_context>

<pallas_src>
import jax
import jax.numpy as jnp
from jax import lax
from jax.experimental import pallas as pl
from jax.experimental.pallas import tpu as pltpu


def _round_up(x, m):
    return (x + m - 1) // m * m


def value_net_kernel(x_ref, w1_ref, b1_ref, w2_ref, b2_ref, w3_ref, b3_ref, o_ref):
    """One batch tile; batch lives on the lane axis of all intermediates.

    x  : (tile_b, input_dim) f32   natural layout (cast to bf16 in-kernel)
    w1 : (hidden, input_dim) bf16  PyTorch (out, in) layout
    b1 : (hidden, 1)         f32
    w2 : (hidden, hidden)    bf16
    b2 : (hidden, 1)         f32
    w3 : (hidden, 1)         bf16  value_head weight, transposed
    b3 : (1, 1)              f32   SMEM scalar
    o  : (1, tile_b)         f32   lane-dense over batch
    """
    xb = x_ref[...].astype(jnp.bfloat16)

    # fc1 + ReLU: contract input_dim of both operands -> (hidden, tile_b).
    # NT matmul (same pattern as q @ k^T); the orientation flip rides the MXU
    # feed / idle XLU slots instead of an extra HBM pass.
    h1 = lax.dot_general(w1_ref[...], xb, (((1,), (1,)), ((), ())),
                         preferred_element_type=jnp.float32)
    h1 = jnp.maximum(h1 + b1_ref[...], 0.0)

    # fc2 + ReLU: (hidden, hidden) @ (hidden, tile_b), f32 accumulation.
    h2 = jnp.dot(w2_ref[...], h1.astype(w2_ref.dtype),
                 preferred_element_type=jnp.float32)
    h2 = jnp.maximum(h2 + b2_ref[...], 0.0)

    # value head (hidden -> 1): bf16 VPU multiply + f32 sublane (XLU) reduce —
    # keeps the MXU free of an N=1 matmul, result stays lane-dense over batch.
    prod = (h2.astype(w3_ref.dtype) * w3_ref[...]).astype(jnp.float32)
    v = jnp.sum(prod, axis=0, keepdims=True)
    o_ref[...] = (v + b3_ref[0, 0]).astype(o_ref.dtype)


def value_network_forward(x, params, *, tile_b=4096, min_grid_steps=2):
    """x: (B, input_dim) float32.  params: dict from init_params().  Returns (B, 1)."""
    B, input_dim = x.shape
    hidden = params["w1"].shape[0]

    # ---- batch tiling -------------------------------------------------------
    # Per-grid-step overhead (~0.35us) dominates at small tiles, so use a few
    # thousand batch elements per step.  Small B -> single tile; large B ->
    # at least `min_grid_steps` steps so v7x's 2 TensorCores both get work.
    tile_b = _round_up(min(max(tile_b, 128), 8192), 128)
    b_single = _round_up(B, 128)
    if b_single <= tile_b:
        tile_b = b_single
    else:
        tile_b = min(tile_b, _round_up(pl.cdiv(B, min_grid_steps), 128))
    grid_b = pl.cdiv(B, tile_b)
    B_pad = grid_b * tile_b      # output padding only; x is NOT padded in HBM

    in_specs = [
        # Activations, natural layout.  Ragged tail: the last block reads past
        # B (garbage rows) — those lanes are sliced off after the call.
        pl.BlockSpec((tile_b, input_dim), lambda i: (i, 0)),
        # Weights / biases: whole arrays, constant block index -> fetched once
        # and resident across all batch tiles.
        pl.BlockSpec((hidden, input_dim), lambda i: (0, 0)),
        pl.BlockSpec((hidden, 1), lambda i: (0, 0)),
        pl.BlockSpec((hidden, hidden), lambda i: (0, 0)),
        pl.BlockSpec((hidden, 1), lambda i: (0, 0)),
        pl.BlockSpec((hidden, 1), lambda i: (0, 0)),
        # Scalar output bias in SMEM (a (1,1) VMEM block would pad to a tile).
        pl.BlockSpec(memory_space=pltpu.MemorySpace.SMEM),
    ]
    out_specs = pl.BlockSpec((1, tile_b), lambda i: (0, i))

    flops = 2 * B_pad * (input_dim * hidden + hidden * hidden + hidden)
    bytes_accessed = int(
        B * input_dim * 4                                        # one f32 pass over x
        + (hidden * input_dim + hidden * hidden + hidden) * 2    # bf16 weights
        + (2 * hidden + 1) * 4                                   # f32 biases
        + B_pad * 4                                              # f32 values out
    )

    out = pl.pallas_call(
        value_net_kernel,
        out_shape=jax.ShapeDtypeStruct((1, B_pad), jnp.float32),
        grid_spec=pltpu.PrefetchScalarGridSpec(
            num_scalar_prefetch=0,
            grid=(grid_b,),
            in_specs=in_specs,
            out_specs=out_specs,
        ),
        compiler_params=pltpu.CompilerParams(
            # TODO(synk): consider pltpu.CORE_PARALLEL here when targeting v7x.
            dimension_semantics=("parallel",),
        ),
        cost_estimate=pl.CostEstimate(
            flops=flops, transcendentals=0, bytes_accessed=bytes_accessed),
    )(x, params["w1"], params["b1"], params["w2"], params["b2"],
      params["w3"], params["b3"])

    # strip batch padding, restore (B, 1) value shape
    return out[0, :B].reshape(B, 1)


def init_params(key, input_dim, hidden_dim):
    """Deterministic synthetic init mirroring nn.Linear fan-in scaling.

    Weights kept in PyTorch (out, in) layout (bf16); biases as (out, 1) f32
    columns so they broadcast over the lane (batch) axis inside the kernel.
    """
    k1, k2, k3, k4, k5, k6 = jax.random.split(key, 6)

    def lin(kw, kb, fan_in, fan_out):
        bound = 1.0 / jnp.sqrt(fan_in)
        w = jax.random.uniform(kw, (fan_out, fan_in), jnp.float32, -bound, bound)
        b = jax.random.uniform(kb, (fan_out,), jnp.float32, -bound, bound)
        return w, b

    w1, b1 = lin(k1, k2, input_dim, hidden_dim)
    w2, b2 = lin(k3, k4, hidden_dim, hidden_dim)
    w3, b3 = lin(k5, k6, hidden_dim, 1)
    return {
        "w1": w1.astype(jnp.bfloat16),                 # (hidden, in)
        "b1": b1.reshape(hidden_dim, 1),               # (hidden, 1) f32
        "w2": w2.astype(jnp.bfloat16),                 # (hidden, hidden)
        "b2": b2.reshape(hidden_dim, 1),               # (hidden, 1) f32
        "w3": w3.T.astype(jnp.bfloat16),               # (hidden, 1)
        "b3": b3.reshape(1, 1),                        # (1, 1) f32
    }


def value_network_ref(x, p):
    """Pure-JAX reference with matching numerics (bf16 operands, f32 accumulate)."""
    xb = x.astype(jnp.bfloat16)
    h1 = lax.dot_general(xb, p["w1"], (((1,), (1,)), ((), ())),
                         preferred_element_type=jnp.float32) + p["b1"].T
    h1 = jnp.maximum(h1, 0.0)
    h2 = jnp.dot(h1.astype(jnp.bfloat16), p["w2"].T,
                 preferred_element_type=jnp.float32) + p["b2"].T
    h2 = jnp.maximum(h2, 0.0)
    prod = (h2.astype(jnp.bfloat16) * p["w3"][:, 0]).astype(jnp.float32)
    return jnp.sum(prod, axis=1, keepdims=True) + p["b3"][0, 0]


if __name__ == "__main__":
    key = jax.random.PRNGKey(0)
    k_x, k_p = jax.random.split(key)

    B, input_dim, hidden_dim = 200, 16, 32   # ragged batch exercises tail handling
    x = jax.random.normal(k_x, (B, input_dim), jnp.float32)
    params = init_params(k_p, input_dim, hidden_dim)
    ref = value_network_ref(x, params)

    # Default path: single large tile (grid=(1,)).
    out_big = jax.block_until_ready(value_network_forward(x, params))
    # Multi-step path: tile_b=128 -> grid=(2,), ragged last block.
    out_small = jax.block_until_ready(value_network_forward(x, params, tile_b=128))

    for out in (out_big, out_small):
        assert out.shape == (B, 1)
        assert jnp.allclose(out, ref, atol=2e-3, rtol=2e-3), "mismatch vs reference"

    print("KERNEL_OK")
</pallas_src>

<mosaic_0001>
module attributes {stable_mosaic.version = 11 : i64} {
  func.func @value_net_kernel(%arg0: i32, %arg1: memref<256x16xf32, #tpu.memory_space<vmem>>, %arg2: memref<32x16xbf16, #tpu.memory_space<vmem>>, %arg3: memref<32x1xf32, #tpu.memory_space<vmem>>, %arg4: memref<32x32xbf16, #tpu.memory_space<vmem>>, %arg5: memref<32x1xf32, #tpu.memory_space<vmem>>, %arg6: memref<32x1xbf16, #tpu.memory_space<vmem>>, %arg7: memref<1x1xf32, #tpu.memory_space<smem>>, %arg8: memref<1x256xf32, #tpu.memory_space<vmem>>) attributes {dimension_semantics = [#tpu.dimension_semantics<parallel>], iteration_bounds = array<i64: 1>, scalar_prefetch = 0 : i64, scratch_operands = 0 : i64, tpu.core_type = #tpu.core_type<tc>, window_params = [{transform_indices = @transform_0, window_bounds = array<i64: 256, 16>}, {pipeline_mode = #tpu.pipeline_mode<synchronous>, transform_indices = @transform_1, window_bounds = array<i64: 32, 16>}, {pipeline_mode = #tpu.pipeline_mode<synchronous>, transform_indices = @transform_2, window_bounds = array<i64: 32, 1>}, {pipeline_mode = #tpu.pipeline_mode<synchronous>, transform_indices = @transform_3, window_bounds = array<i64: 32, 32>}, {pipeline_mode = #tpu.pipeline_mode<synchronous>, transform_indices = @transform_4, window_bounds = array<i64: 32, 1>}, {pipeline_mode = #tpu.pipeline_mode<synchronous>, transform_indices = @transform_5, window_bounds = array<i64: 32, 1>}, {transform_indices = @transform_6, window_bounds = array<i64: 1, 1>}, {transform_indices = @transform_7, window_bounds = array<i64: 1, 256>}]} {
    %c0 = arith.constant 0 : index
    %c0_0 = arith.constant 0 : index
    %0 = vector.load %arg1[%c0, %c0_0] : memref<256x16xf32, #tpu.memory_space<vmem>>, vector<256x16xf32>
    %1 = arith.truncf %0 : vector<256x16xf32> to vector<256x16xbf16>
    %c0_1 = arith.constant 0 : index
    %c0_2 = arith.constant 0 : index
    %2 = vector.load %arg2[%c0_1, %c0_2] : memref<32x16xbf16, #tpu.memory_space<vmem>>, vector<32x16xbf16>
    %cst = arith.constant dense<0.000000e+00> : vector<32x256xf32>
    %3 = tpu.matmul %2, %1, %cst {dimension_numbers = #tpu.dot_dimension_numbers<[1], [1], [0], [0], [0, 0, 1, 0], [], []>} : vector<32x16xbf16>, vector<256x16xbf16>, vector<32x256xf32> -> vector<32x256xf32>
    %c0_3 = arith.constant 0 : index
    %c0_4 = arith.constant 0 : index
    %4 = vector.load %arg3[%c0_3, %c0_4] : memref<32x1xf32, #tpu.memory_space<vmem>>, vector<32x1xf32>
    %5 = vector.broadcast %4 : vector<32x1xf32> to vector<32x256xf32>
    %6 = arith.addf %3, %5 : vector<32x256xf32>
    %cst_5 = arith.constant 0.000000e+00 : f32
    %7 = vector.broadcast %cst_5 : f32 to vector<32x256xf32>
    %8 = arith.maximumf %6, %7 : vector<32x256xf32>
    %c0_6 = arith.constant 0 : index
    %c0_7 = arith.constant 0 : index
    %9 = vector.load %arg4[%c0_6, %c0_7] : memref<32x32xbf16, #tpu.memory_space<vmem>>, vector<32x32xbf16>
    %10 = arith.truncf %8 : vector<32x256xf32> to vector<32x256xbf16>
    %cst_8 = arith.constant dense<0.000000e+00> : vector<32x256xf32>
    %11 = tpu.matmul %9, %10, %cst_8 {dimension_numbers = #tpu.dot_dimension_numbers<[1], [0], [0], [1], [0, 0, 1, 1], [], []>} : vector<32x32xbf16>, vector<32x256xbf16>, vector<32x256xf32> -> vector<32x256xf32>
    %c0_9 = arith.constant 0 : index
    %c0_10 = arith.constant 0 : index
    %12 = vector.load %arg5[%c0_9, %c0_10] : memref<32x1xf32, #tpu.memory_space<vmem>>, vector<32x1xf32>
    %13 = vector.broadcast %12 : vector<32x1xf32> to vector<32x256xf32>
    %14 = arith.addf %11, %13 : vector<32x256xf32>
    %cst_11 = arith.constant 0.000000e+00 : f32
    %15 = vector.broadcast %cst_11 : f32 to vector<32x256xf32>
    %16 = arith.maximumf %14, %15 : vector<32x256xf32>
    %17 = arith.truncf %16 : vector<32x256xf32> to vector<32x256xbf16>
    %c0_12 = arith.constant 0 : index
    %c0_13 = arith.constant 0 : index
    %18 = vector.load %arg6[%c0_12, %c0_13] : memref<32x1xbf16, #tpu.memory_space<vmem>>, vector<32x1xbf16>
    %19 = vector.broadcast %18 : vector<32x1xbf16> to vector<32x256xbf16>
    %20 = arith.mulf %17, %19 : vector<32x256xbf16>
    %21 = arith.extf %20 : vector<32x256xbf16> to vector<32x256xf32>
    %cst_14 = arith.constant dense<0.000000e+00> : vector<256xf32>
    %22 = vector.multi_reduction <add>, %21, %cst_14 [0] : vector<32x256xf32> to vector<256xf32>
    %23 = vector.shape_cast %22 : vector<256xf32> to vector<1x256xf32>
    %c0_15 = arith.constant 0 : index
    %c0_16 = arith.constant 0 : index
    %24 = memref.load %arg7[%c0_15, %c0_16] : memref<1x1xf32, #tpu.memory_space<smem>>
    %25 = vector.broadcast %24 : f32 to vector<1x256xf32>
    %26 = arith.addf %23, %25 : vector<1x256xf32>
    %c0_17 = arith.constant 0 : index
    %c0_18 = arith.constant 0 : index
    %27 = vector.load %arg8[%c0_17, %c0_18] : memref<1x256xf32, #tpu.memory_space<vmem>>, vector<1x256xf32>
    tpu.vector_store %arg8[%c0_17, %c0_18], %26 {strides = array<i32>} : memref<1x256xf32, #tpu.memory_space<vmem>>, vector<1x256xf32>,
    return
  }
  func.func @transform_0(%arg0: i32) -> (i32, i32) {
    %c0_i32 = arith.constant 0 : i32
    %c0_i32_0 = arith.constant 0 : i32
    return %arg0, %c0_i32 : i32, i32
  }
  func.func @transform_1(%arg0: i32) -> (i32, i32) {
    %c0_i32 = arith.constant 0 : i32
    %c0_i32_0 = arith.constant 0 : i32
    %c0_i32_1 = arith.constant 0 : i32
    return %c0_i32, %c0_i32_0 : i32, i32
  }
  func.func @transform_2(%arg0: i32) -> (i32, i32) {
    %c0_i32 = arith.constant 0 : i32
    %c0_i32_0 = arith.constant 0 : i32
    %c0_i32_1 = arith.constant 0 : i32
    return %c0_i32, %c0_i32_0 : i32, i32
  }
  func.func @transform_3(%arg0: i32) -> (i32, i32) {
    %c0_i32 = arith.constant 0 : i32
    %c0_i32_0 = arith.constant 0 : i32
    %c0_i32_1 = arith.constant 0 : i32
    return %c0_i32, %c0_i32_0 : i32, i32
  }
  func.func @transform_4(%arg0: i32) -> (i32, i32) {
    %c0_i32 = arith.constant 0 : i32
    %c0_i32_0 = arith.constant 0 : i32
    %c0_i32_1 = arith.constant 0 : i32
    return %c0_i32, %c0_i32_0 : i32, i32
  }
  func.func @transform_5(%arg0: i32) -> (i32, i32) {
    %c0_i32 = arith.constant 0 : i32
    %c0_i32_0 = arith.constant 0 : i32
    %c0_i32_1 = arith.constant 0 : i32
    return %c0_i32, %c0_i32_0 : i32, i32
  }
  func.func @transform_6(%arg0: i32) -> (i32, i32) {
    %c0_i32 = arith.constant 0 : i32
    %c0_i32_0 = arith.constant 0 : i32
    %c0_i32_1 = arith.constant 0 : i32
    return %c0_i32, %c0_i32_0 : i32, i32
  }
  func.func @transform_7(%arg0: i32) -> (i32, i32) {
    %c0_i32 = arith.constant 0 : i32
    %c0_i32_0 = arith.constant 0 : i32
    return %c0_i32, %arg0 : i32, i32
  }
}

</mosaic_0001>

<bundles_post_ra>
// kernel: tpu_custom_call.1
= control target key start
LH: loop header
LB: loop body
LE: loop exit
PB: predicated region body
PF: predicated region fallthrough
CT: control target
= control target key end

     0   :  { %vm115_vm0 = vcmask 130048   ;;  %v552_v7 = vmov 0   ;;  %s789_s0 = inlined_call_operand.vmem [shape: f32[200,16], index: 0, kind: input, shape index: {}]   ;;  %s790_s1 = inlined_call_operand.vmem [shape: bf16[32,16], index: 1, kind: input, shape index: {}]   ;;  %s791_s2 = inlined_call_operand.vmem [shape: f32[32,1], index: 2, kind: input, shape index: {}]   ;;  %s792_s3 = inlined_call_operand.vmem [shape: bf16[32,32], index: 3, kind: input, shape index: {}]   ;;  %s793_s4 = inlined_call_operand.vmem [shape: f32[32,1], index: 4, kind: input, shape index: {}]   ;;  %s794_s5 = inlined_call_operand.vmem [shape: bf16[32,1], index: 5, kind: input, shape index: {}]   ;;  %s795_s6 = inlined_call_operand.<no memory space> [shape: f32[1,1], index: 6, kind: input, shape index: {}]   ;;  %s796_s7 = inlined_call_operand.hbm [shape: f32[1,256], index: 7, kind: output, shape index: {}]  }
   0x1   :  { %v45_v0 = vld [vmem:[%s789_s0 + $0x80] sm:$0xff]  ;;  %v46_v1 = vld [vmem:[%s789_s0 + $0x88] sm:$0xff]  ;;  %v47_v5 = vld [vmem:[%s789_s0 + $0x90] sm:$0xff]  ;;  %523 = vset.pattern.permute.xlu1 %v552_v7  ;;  %522 = vset.pattern.permute.xlu0 %v552_v7 }
   0x2   :  { %v29_v2 = vld [vmem:[%s789_s0] sm:$0xff]  ;;  %v69_v3 = vpack.c.bf16 %v46_v1, %v45_v0  ;;  %v30_v4 = vld [vmem:[%s789_s0 + $0x8] sm:$0xff]  ;;  %v48_v6 = vld [vmem:[%s789_s0 + $0x98] sm:$0xff]  ;;  %312 = vmatprep.mubr.bf16.mxu1 %v552_v7 }
   0x3   :  { %v61_v8 = vpack.c.bf16 %v30_v4, %v29_v2  ;;  %v70_v9 = vpack.c.bf16 %v48_v6, %v47_v5  ;;  %v31_v10 = vld [vmem:[%s789_s0 + $0x10] sm:$0xff]  ;;  %v32_v11 = vld [vmem:[%s789_s0 + $0x18] sm:$0xff]  ;;  %v49_v14 = vld [vmem:[%s789_s0 + $0xa0] sm:$0xff] }
   0x4   :  { %510 = vmatprep.subr.msk.bf16.mxu0 %vm115_vm0, %v69_v3  ;;  %v62_v13 = vpack.c.bf16 %v32_v11, %v31_v10  ;;  %v50_v15 = vld [vmem:[%s789_s0 + $0xa8] sm:$0xff]  ;;  %v33_v18 = vld [vmem:[%s789_s0 + $0x20] sm:$0xff]  ;;  %v83_v21 = vld [vmem:[%s791_s2 + $0x10] sm:$0xff] }
   0x5   :  { %v123_v12 = vsel %vm115_vm0, %v61_v8, 0  ;;  %v71_v17 = vpack.c.bf16 %v50_v15, %v49_v14  ;;  %v34_v19 = vld [vmem:[%s789_s0 + $0x28] sm:$0xff]  ;;  %v642_v20 = vld [vmem:[%s790_s1] sm:$0xff]   ;;  %97 = vperm.xlu1 %523, %v83_v21   ;;  %v51_v24 = vld [vmem:[%s789_s0 + $0xb0] sm:$0xff] }
   0x6   :  { %491 = vmatpush3.bf16.xpose.msra.mxu0 %v123_v12  ;;  %v126_v16 = vsel %vm115_vm0, %v62_v13, 0  ;;  %506 = vmatprep.mubr.msk.bf16.mxu0 %vm115_vm0, %v642_v20  ;;  %v81_v22 = vld [vmem:[%s791_s2] sm:$0xff]  ;;  %v63_v23 = vpack.c.bf16 %v34_v19, %v33_v18  ;;  %v52_v25 = vld [vmem:[%s789_s0 + $0xb8] sm:$0xff]  ;;  %v82_v27 = vld [vmem:[%s791_s2 + $0x8] sm:$0xff] }
   0x7   :  { %511 = vmatprep.subr.msk.bf16.mxu0 %vm115_vm0, %v70_v9  ;;  %87 = vperm.xlu0 %522, %v81_v22   ;;  %v84_v26 = vld [vmem:[%s791_s2 + $0x18] sm:$0xff]  ;;  %v72_v29 = vpack.c.bf16 %v52_v25, %v51_v24 }
   0x8   :  { %v129_v28 = vsel %vm115_vm0, %v63_v23, 0 }
   0x9   :  { %102 = vperm.xlu1 %523, %v84_v26  }
   0xe   :  { %493 = vmatpush3.bf16.xpose.msra.mxu0 %v126_v16 }
   0xf   :  { %512 = vmatprep.subr.msk.bf16.mxu0 %vm115_vm0, %v71_v17 }
  0x10   :  { %13 = vsyncpa [#allocation4], 0  ;;  %v35_v30 = vld [vmem:[%s789_s0 + $0x30] sm:$0xff]  ;;  %v36_v31 = vld [vmem:[%s789_s0 + $0x38] sm:$0xff]  ;;  %92 = vperm.xlu0 %522, %v82_v27   ;;  %vm273_vm1 = vcmask 261120   ;;  %s555_s22 = smov [#allocation3]  }
  0x11   :  { %v240_v32 = vld [vmem:[%s793_s4 + $0x8] sm:$0xff]  ;;  %v239_v33 = vld [vmem:[%s793_s4] sm:$0xff]  ;;  %v64_v34 = vpack.c.bf16 %v36_v31, %v35_v30  ;;  %v242_v37 = vld [vmem:[%s793_s4 + $0x18] sm:$0xff]  ;;  %s472_s2 = sshll.u32 %s555_s22, 4  ;;  %s473_s2 = int_to_ptr.vmem [resolvable:$true] %s472_s2 }
  0x12   :  { %250 = vperm.xlu1 %523, %v240_v32   ;;  %v53_v35 = vld [vmem:[%s789_s0 + $0xc0] sm:$0xff]  ;;  %v54_v36 = vld [vmem:[%s789_s0 + $0xc8] sm:$0xff]  ;;  %v241_v38 = vld [vmem:[%s793_s4 + $0x10] sm:$0xff]  ;;  %s528_s23 = scalar_lea.vmem %s473_s2, 32  ;;  %p533_p1 = scmp.lt.s32.totalorder %s473_s2, %s473_s2 }
  0x13   :  { %v132_v39 = vsel %vm115_vm0, %v64_v34, 0  ;;  %v73_v40 = vpack.c.bf16 %v54_v36, %v53_v35  ;;  %v37_v41 = vld [vmem:[%s789_s0 + $0x40] sm:$0xff]  ;;  %v38_v42 = vld [vmem:[%s789_s0 + $0x48] sm:$0xff]  ;;  %v55_v46 = vld [vmem:[%s789_s0 + $0xd0] sm:$0xff]  ;;  %p529_p0 = scmp.ne.s32.totalorder %s473_s2, %s528_s23  ;;  %p534_p2 = scmp.lt.s32.totalorder %s528_s23, %s528_s23 }
  0x14   :  { %245 = vperm.xlu0 %522, %v239_v33   ;;  %v346_v43 = vld [vmem:[%s794_s5 + $0x4] sm:$0xf]  ;;  %v345_v44 = vld [vmem:[%s794_s5] sm:$0xf]  ;;  %v65_v45 = vpack.c.bf16 %v38_v42, %v37_v41  ;;  %v56_v47 = vld [vmem:[%s789_s0 + $0xd8] sm:$0xff] }
  0x15   :  { %v348_v48 = vld [vmem:[%s794_s5 + $0xc] sm:$0xf]  ;;  %v347_v49 = vld [vmem:[%s794_s5 + $0x8] sm:$0xf]  ;;  %v74_v51 = vpack.c.bf16 %v56_v47, %v55_v46  ;;  %v39_v52 = vld [vmem:[%s789_s0 + $0x50] sm:$0xff]  ;;  %v357_v46 = vlaneseq  ;;  %p535_p3 = por %p534_p2, %p533_p1 }
  0x16   :  { %495 = vmatpush3.bf16.xpose.msra.mxu0 %v129_v28  ;;  %260 = vperm.xlu1 %523, %v242_v37   ;;  %v135_v50 = vsel %vm115_vm0, %v65_v45, 0  ;;  %v40_v53 = vld [vmem:[%s789_s0 + $0x58] sm:$0xff]  ;;  %v57_v55 = vld [vmem:[%s789_s0 + $0xe0] sm:$0xff]  ;;  %v58_v56 = vld [vmem:[%s789_s0 + $0xe8] sm:$0xff] }
  0x17   :  { %513 = vmatprep.subr.msk.bf16.mxu0 %vm115_vm0, %v72_v29  ;;  %v66_v54 = vpack.c.bf16 %v40_v53, %v39_v52  ;;  %v75_v58 = vpack.c.bf16 %v58_v56, %v57_v55  ;;  %v41_v59 = vld [vmem:[%s789_s0 + $0x60] sm:$0xff]  ;;  %v42_v60 = vld [vmem:[%s789_s0 + $0x68] sm:$0xff]  ;;  %v59_v62 = vld [vmem:[%s789_s0 + $0xf0] sm:$0xff]  ;;  %vm463_vm2 = vcmp.lt.s32.totalorder %v357_v46, 256  ;;  %p536_p4 = pnand %p535_p3, %p529_p0 }
  0x18   :  { %255 = vperm.xlu0 %522, %v241_v38   ;;  %v67_v61 = vpack.c.bf16 %v42_v60, %v41_v59  ;;  %v60_v63 = vld [vmem:[%s789_s0 + $0xf8] sm:$0xff]  ;;  %v43_v2 = vld [vmem:[%s789_s0 + $0x70] sm:$0xff]  ;;  %v525_v6 = vld [vmem:[%s790_s1 + $0x8] sm:$0xff]  }
  0x19   :  { %v138_v57 = vsel %vm115_vm0, %v66_v54, 0  ;;  %v76_v1 = vpack.c.bf16 %v60_v63, %v59_v62  ;;  %v44_v3 = vld [vmem:[%s789_s0 + $0x78] sm:$0xff]  ;;  %v527_v41 = vld [vmem:[%s792_s3 + $0x8] sm:$0xff]  }
  0x1a   :  { %363 = vperm.xlu1 %523, %v346_v43   ;;  %v141_v0 = vsel %vm115_vm0, %v67_v61, 0  ;;  %v68_v4 = vpack.c.bf16 %v44_v3, %v43_v2 }
  0x1c   :  { %351 = vperm.xlu0 %522, %v345_v44   ;;  %v144_v5 = vsel %vm115_vm0, %v68_v4, 0  ;;  %v553_v44 = vmov 839922192  }
  0x1d   :  { %v355_v45 = vunpack.c.l.s4 %v553_v44 }
  0x1e   :  { %497 = vmatpush3.bf16.xpose.msra.mxu0 %v132_v39  ;;  %387 = vperm.xlu1 %523, %v348_v48  }
  0x1f   :  { %514 = vmatprep.subr.msk.bf16.mxu0 %vm115_vm0, %v73_v40  ;;  %v526_v40 = vld [vmem:[%s792_s3] sm:$0xff]  }
  0x20   :  { %375 = vperm.xlu0 %522, %v347_v49   ;;  %v356_v49 = vunpack.c.0.s8 %v355_v45 }
  0x26   :  { %499 = vmatpush3.bf16.xpose.msra.mxu0 %v135_v50  ;;  %v769_v50 = vshrl.u32 %v357_v46, 7 }
  0x27   :  { %515 = vmatprep.subr.msk.bf16.mxu0 %vm115_vm0, %v74_v51 }
  0x28   :  { %v359_v52 = vsub.s32 %v356_v49, %v769_v50 }
  0x2e   :  { %501 = vmatpush3.bf16.xpose.msra.mxu0 %v138_v57 }
  0x2f   :  { %516 = vmatprep.subr.msk.bf16.mxu0 %vm115_vm0, %v75_v58 }
  0x36   :  { %503 = vmatpush3.bf16.xpose.msra.mxu0 %v141_v0 }
  0x37   :  { %517 = vmatprep.subr.msk.bf16.mxu0 %vm115_vm0, %v76_v1 }
  0x3e   :  { %505 = vmatpush3.bf16.xpose.msra.mxu0 %v144_v5 }
  0x45   :  { %507 = vmatmul.mubr.msk.bf16.vlgmr.msra.gmra.mrb[0].mxu0 %vm115_vm0, %v642_v20 }
  0x46   :  { %508 = vmatprep.mubr.msk.bf16.mxu0 %vm115_vm0, %v525_v6 }
  0x4d   :  { %509 = vmatmul.mubr.msk.bf16.gmra.mrb[4].mxu0 %vm115_vm0, %v525_v6 }
  0x84   :  { %v98_v17 = vpop.permute.xlu1 %97 }
  0x86   :  { %v88_v8 = vpop.permute.xlu0 %87 }
  0x88   :  { %v103_v28 = vpop.permute.xlu1 %102 }
  0x8f   :  { %v93_v12 = vpop.permute.xlu0 %92 }
  0x91   :  { %v251_v42 = vpop.permute.xlu1 %250 }
  0x93   :  { %v246_v43 = vpop.permute.xlu0 %245 }
  0x95   :  { %v261_v47 = vpop.permute.xlu1 %260 }
  0x97   :  { %v256_v48 = vpop.permute.xlu0 %255 }
  0x9b   :  { %v352_v55 = vpop.permute.xlu0 %351 }
  0x9c   :  { %v360_v62 = vrot.slane %v352_v55, %v359_v52 }
  0x9f   :  { %v376_v5 = vpop.permute.xlu0 %375 }
 0x118   :  { %v204_v9 = vpop.f32.mrb[0].mxu0 }
 0x119   :  { %v205_v10 = vadd.f32 %v204_v9, %v88_v8  ;;  %v206_v11 = vpop.f32.mrb[1].mxu0 }
 0x11a   :  { %v207_v13 = vadd.f32 %v206_v11, %v88_v8  ;;  %v208_v14 = vpop.f32.mrb[2].mxu0 }
 0x11b   :  { %v209_v15 = vadd.f32 %v208_v14, %v93_v12  ;;  %v210_v16 = vpop.f32.mrb[3].mxu0  ;;  %v223_v19 = vmax.f32 %v205_v10, 0.0 }
 0x11c   :  { %v211_v18 = vadd.f32 %v210_v16, %v93_v12  ;;  %v224_v22 = vmax.f32 %v207_v13, 0.0 }
 0x11d   :  { %v225_v21 = vmax.f32 %v209_v15, 0.0  ;;  %v384_v15 = vrot.slane %v376_v5, %v359_v52 }
 0x11e   :  { %v226_v23 = vmax.f32 %v211_v18, 0.0 }
 0x11f   :  { %v235_v20 = vpack.c.bf16 %v225_v21, %v223_v19 }
 0x120   :  { %v214_v24 = vpop.f32.mrb[4].mxu0  ;;  %v236_v25 = vpack.c.bf16 %v226_v23, %v224_v22 }
 0x121   :  { %v215_v26 = vadd.f32 %v214_v24, %v98_v17  ;;  %v216_v27 = vpop.f32.mrb[5].mxu0 }
 0x122   :  { %v217_v29 = vadd.f32 %v216_v27, %v98_v17  ;;  %v218_v30 = vpop.f32.mrb[6].mxu0  ;;  %280 = vmatprep.subr.bf16.mxu1 %v236_v25 }
 0x123   :  { %v219_v31 = vadd.f32 %v218_v30, %v103_v28  ;;  %v220_v32 = vpop.f32.mrb[7].mxu0  ;;  %281 = vmatpush1.bf16.msra.mxu1 %v235_v20  ;;  %v227_v34 = vmax.f32 %v215_v26, 0.0 }
 0x124   :  { %v221_v33 = vadd.f32 %v220_v32, %v103_v28  ;;  %v228_v36 = vmax.f32 %v217_v29, 0.0 }
 0x125   :  { %v229_v35 = vmax.f32 %v219_v31, 0.0 }
 0x126   :  { %v230_v37 = vmax.f32 %v221_v33, 0.0 }
 0x127   :  { %v237_v38 = vpack.c.bf16 %v229_v35, %v227_v34 }
 0x128   :  { %v238_v39 = vpack.c.bf16 %v230_v37, %v228_v36 }
 0x12a   :  { %282 = vmatprep.subr.bf16.mxu1 %v238_v39 }
 0x12b   :  { %283 = vmatpush1.bf16.msra.mxu1 %v237_v38 }
 0x12e   :  { %486 = vmatmul.mubr.msk.bf16.vlgmr.msra.gmra.mrb[0].mxu1 %vm273_vm1, %v526_v40 }
 0x12f   :  { %322 = vmatprep.mubr.bf16.mxu1 %v552_v7  ;;  %v364_v7 = vpop.permute.xlu1 %363 }
 0x130   :  { %v372_v61 = vrot.slane %v364_v7, %v359_v52 }
 0x132   :  { %v488_v9 = vcombine.low %v360_v62, %v372_v61 }
 0x133   :  { %v388_v3 = vpop.permute.xlu1 %387 }
 0x134   :  { %v396_v14 = vrot.slane %v388_v3, %v359_v52  ;;  %v554_v52 = vmov 1966171168  }
 0x135   :  { %v447_v7 = vunpack.c.l.s4 %v554_v52 }
 0x136   :  { %487 = vmatmul.mubr.msk.bf16.gmra.mrb[4].mxu1 %vm273_vm1, %v527_v41  ;;  %v489_v25 = vcombine.low %v384_v15, %v396_v14 }
 0x201   :  { %v314_v51 = vpop.f32.mrb[0].mxu1 }
 0x202   :  { %v315_v53 = vadd.f32 %v314_v51, %v246_v43  ;;  %v316_v54 = vpop.f32.mrb[1].mxu1 }
 0x203   :  { %v317_v56 = vadd.f32 %v316_v54, %v246_v43  ;;  %v318_v57 = vpop.f32.mrb[2].mxu1 }
 0x204   :  { %v319_v58 = vadd.f32 %v318_v57, %v251_v42  ;;  %v320_v59 = vpop.f32.mrb[3].mxu1  ;;  %v333_v63 = vmax.f32 %v315_v53, 0.0  ;;  %v440_v57 = vstv %s795_s6 }
 0x205   :  { %v321_v60 = vadd.f32 %v320_v59, %v251_v42  ;;  %v334_v1 = vmax.f32 %v317_v56, 0.0 }
 0x206   :  { %v335_v0 = vmax.f32 %v319_v58, 0.0  ;;  %v448_v58 = vunpack.c.0.s8 %v447_v7 }
 0x207   :  { %v336_v2 = vmax.f32 %v321_v60, 0.0 }
 0x208   :  { %v341_v4 = vpack.c.bf16 %v335_v0, %v333_v63  ;;  %v451_v63 = vsub.s32 %v448_v58, %v769_v50 }
 0x209   :  { %v342_v6 = vpack.c.bf16 %v336_v2, %v334_v1  ;;  %v324_v8 = vpop.f32.mrb[4].mxu1 }
 0x20a   :  { %v325_v10 = vadd.f32 %v324_v8, %v256_v48  ;;  %v326_v11 = vpop.f32.mrb[5].mxu1  ;;  %v409_v16 = vmul.bf16 %v488_v9, %v341_v4 }
 0x20b   :  { %v327_v12 = vadd.f32 %v326_v11, %v256_v48  ;;  %v328_v13 = vpop.f32.mrb[6].mxu1  ;;  %v410_v19 = vmul.bf16 %v488_v9, %v342_v6 }
 0x20c   :  { %v329_v17 = vadd.f32 %v328_v13, %v261_v47  ;;  %v330_v18 = vpop.f32.mrb[7].mxu1  ;;  %v337_v22 = vmax.f32 %v325_v10, 0.0  ;;  %v413_v26 = vunpack.c.l.bf16 %v409_v16  ;;  %v415_v27 = vunpack.c.h.bf16 %v409_v16 }
 0x20d   :  { %v331_v21 = vadd.f32 %v330_v18, %v261_v47  ;;  %v338_v20 = vmax.f32 %v327_v12, 0.0  ;;  %v414_v29 = vunpack.c.l.bf16 %v410_v19  ;;  %v416_v30 = vunpack.c.h.bf16 %v410_v19 }
 0x20e   :  { %v339_v23 = vmax.f32 %v329_v17, 0.0  ;;  %v421_v34 = vadd.f32 %v415_v27, %v413_v26 }
 0x20f   :  { %v340_v24 = vmax.f32 %v331_v21, 0.0  ;;  %v430_v36 = vadd.f32 %v416_v30, %v414_v29 }
 0x210   :  { %v343_v28 = vpack.c.bf16 %v339_v23, %v337_v22 }
 0x211   :  { %v344_v31 = vpack.c.bf16 %v340_v24, %v338_v20 }
 0x212   :  { %v411_v32 = vmul.bf16 %v489_v25, %v343_v28 }
 0x213   :  { %v412_v33 = vmul.bf16 %v489_v25, %v344_v31 }
 0x214   :  { %v417_v35 = vunpack.c.l.bf16 %v411_v32  ;;  %v419_v38 = vunpack.c.h.bf16 %v411_v32 }
 0x215   :  { %v418_v37 = vunpack.c.l.bf16 %v412_v33  ;;  %v420_v40 = vunpack.c.h.bf16 %v412_v33 }
 0x216   :  { %v422_v39 = vadd.f32 %v421_v34, %v417_v35 }
 0x217   :  { %v431_v41 = vadd.f32 %v430_v36, %v418_v37 }
 0x218   :  { %v423_v42 = vadd.f32 %v422_v39, %v419_v38 }
 0x219   :  { %v432_v43 = vadd.f32 %v431_v41, %v420_v40 }
 0x21a   :  { %v424_v44 = vrot.slane %v423_v42, 4 }
 0x21b   :  { %v433_v45 = vrot.slane %v432_v43, 4 }
 0x21c   :  { %v425_v47 = vadd.f32 %v424_v44, %v423_v42 }
 0x21d   :  { %v434_v48 = vadd.f32 %v433_v45, %v432_v43 }
 0x21e   :  { %v426_v49 = vrot.slane %v425_v47, 2 }
 0x21f   :  { %v435_v51 = vrot.slane %v434_v48, 2 }
 0x220   :  { %v427_v53 = vadd.f32 %v426_v49, %v425_v47 }
 0x221   :  { %v436_v54 = vadd.f32 %v435_v51, %v434_v48 }
 0x222   :  { %v428_v55 = vrot.slane %v427_v53, 1 }
 0x223   :  { %v437_v56 = vrot.slane %v436_v54, 1 }
 0x224   :  { %v429_v59 = vadd.f32 %v428_v55, %v427_v53 }
 0x225   :  { %v438_v60 = vadd.f32 %v437_v56, %v436_v54 }
 0x226   :  { %v441_v61 = vadd.f32 %v440_v57, %v429_v59 }
 0x227   :  { %v442_v62 = vadd.f32 %v440_v57, %v438_v60 }
 0x229   :  { %v445_v0 = vcombine.low %v441_v61, %v442_v62 }
 0x22b   :  { %v452_v1 = vrot.slane %v445_v0, %v451_v63 }
 0x22d   :  { %v459_v2 = vrot.slane %v452_v1, %v451_v63 }
 0x22f   :  { %465 = vst.msk [vmem:[#allocation3] sm:$0x3] %vm463_vm2, %v459_v2 }
 0x230   :  { %539 = shalt.err (!%p536_p4)
}
 0x231   :  { %s540_s25 = scalar_lea.hbm %s796_s7, 32 }
 0x232   :  { %p541_p5 = scmp.ne.s32.totalorder %s796_s7, %s540_s25  ;;  %p544_p6 = scmp.lt.u32.totalorder %s540_s25, %s796_s7 }
 0x234   :  { %p546_p7 = pnand %p544_p6, %p541_p5 }
 0x236   :  { %549 = shalt.err (!%p546_p7)
}
 0x237   :  { %475 = dma.vmem_to_hbm [thread:$0]  %s473_s2, 32, %s796_s7, [#allocation4]  }
 0x238   :  { %550 = dma.done.wait [#allocation4], 32  }
 0x239   :  { %551 = vsyncadd [#allocation4], 4294967264 }
 0x23a   :  { %479 = vsyncpa [#allocation4], 1 }

</bundles_post_ra>
